<compile_context>
chip_gen: v7x
topology: tpu7x:2x2x1
jax: 0.10.0
libtpu: 0.0.40
codegen_flags: <defaults>
</compile_context>

<pallas_src>
import jax
import jax.numpy as jnp
from jax.experimental import pallas as pl
from jax.experimental.pallas import tpu as pltpu


_MIB = 1024 * 1024
_LANE = 128
_SUBLANE = 8
_MIN_GRID_STEPS = 8            # target total grid steps (pipelining + dual-TC sharding)
_MIN_TILE_VMEM_BYTES = 2 * _MIB  # keep per-step work well above the ~0.35 us step overhead


def _round_up(x: int, m: int) -> int:
    return ((x + m - 1) // m) * m


def _cdiv(a: int, b: int) -> int:
    return -(-a // b)


def _vmem_capacity_bytes() -> int:
    """Physical VMEM per TensorCore; conservative fallback if the query is unavailable."""
    try:
        cap = int(pltpu.get_tpu_info().vmem_capacity_bytes)
    except Exception:
        cap = 64 * _MIB            # v7x per-TensorCore VMEM (the smallest generation)
    return max(cap, 32 * _MIB)


def _tile_plan(total: int, other_steps: int, unit_vmem_bytes: int,
               weight_vmem_bytes: int, granule: int):
    """Pick (tile, vmem_limit_bytes) for streaming `total` units along one grid axis.

    `unit_vmem_bytes` is the *padded* VMEM footprint of one unit of the tiled axis
    (lane dim padded to 128, sublane dim to 8), so lane-sparse channel counts are
    accounted for correctly.  The streaming budget covers 2 double-buffered input
    tiles + 2 output tiles, minus the (double-buffered) resident weight.
    """
    cap = _vmem_capacity_bytes()
    # ~48 MiB on v7x (64 MiB/TC), ~96-100 MiB on v5e/v6e (128 MiB).
    vmem_limit = min((cap * 3) // 4, 100 * _MIB)

    budget = vmem_limit - 2 * weight_vmem_bytes - 2 * _MIB   # 2 MiB slack
    budget = max(budget, 2 * _MIB)
    max_tile = max(budget // (4 * unit_vmem_bytes), 1)

    # Enough grid steps for overlap / dual-TC sharding, but each tile >= ~2 MiB.
    steps_here = max(1, _cdiv(_MIN_GRID_STEPS, max(other_steps, 1)))
    want = _cdiv(total, steps_here)
    floor = max(_MIN_TILE_VMEM_BYTES // unit_vmem_bytes, 1)
    tile = max(min(max_tile, want), min(floor, max_tile))
    tile = min(tile, total)
    if tile < total:
        # Tiled (non-full-extent) blocks must respect the (8, 128) granularity.
        tile = max((tile // granule) * granule, granule)
        tile = min(tile, total)
    return int(tile), int(vmem_limit)


# ---------------------------------------------------------------------------
# Kernels
# ---------------------------------------------------------------------------
def _mix_ncl_kernel(w_ref, x_ref, o_ref):
    # w: (C, C) f32, VMEM-resident.  x tile: (C, TILE_N) -> o tile: (C, TILE_N),
    # lane-dense output stores.  f32 MXU accumulation.
    o_ref[...] = jnp.dot(
        w_ref[...], x_ref[...].astype(jnp.float32),
        preferred_element_type=jnp.float32,
    ).astype(o_ref.dtype)


def _mix_rows_kernel(wt_ref, x_ref, o_ref):
    # wt = W^T (pre-transposed on host): (C, C) f32, VMEM-resident.
    # x tile: (TILE_R, C) -> o tile: (TILE_R, C).  f32 MXU accumulation.
    o_ref[...] = jnp.dot(
        x_ref[...].astype(jnp.float32), wt_ref[...],
        preferred_element_type=jnp.float32,
    ).astype(o_ref.dtype)


# ---------------------------------------------------------------------------
# pallas_call wrappers
# ---------------------------------------------------------------------------
def _channel_mix_ncl(x, w32):
    """x: [B, C, N] -> z[b] = W @ x[b], streamed in (C, TILE_N) tiles along N."""
    b, c, n = x.shape
    out_dtype = jnp.promote_types(x.dtype, w32.dtype)
    itemsize = jnp.dtype(out_dtype).itemsize
    unit_vmem = _round_up(c, _SUBLANE) * itemsize                       # per lane column
    weight_vmem = _round_up(c, _SUBLANE) * _round_up(c, _LANE) * 4
    tile_n, vmem_limit = _tile_plan(n, b, unit_vmem, weight_vmem, _LANE)
    grid = (b, pl.cdiv(n, tile_n))
    return pl.pallas_call(
        _mix_ncl_kernel,
        out_shape=jax.ShapeDtypeStruct((b, c, n), out_dtype),
        grid=grid,
        in_specs=[
            pl.BlockSpec((c, c), lambda bi, ni: (0, 0)),                # W stays resident
            pl.BlockSpec((None, c, tile_n), lambda bi, ni: (bi, 0, ni)),
        ],
        out_specs=pl.BlockSpec((None, c, tile_n), lambda bi, ni: (bi, 0, ni)),
        compiler_params=pltpu.CompilerParams(
            dimension_semantics=("parallel", "parallel"),
            vmem_limit_bytes=vmem_limit,
        ),
    )(w32, x)


def _channel_mix_rows(x2d, wt32):
    """x2d: [R, C] -> x2d @ W^T, streamed in (TILE_R, C) row tiles (R = B*N collapsed)."""
    r, c = x2d.shape
    out_dtype = jnp.promote_types(x2d.dtype, wt32.dtype)
    itemsize = jnp.dtype(out_dtype).itemsize
    unit_vmem = _round_up(c, _LANE) * itemsize          # lane-padded VMEM bytes per row
    weight_vmem = _round_up(c, _SUBLANE) * _round_up(c, _LANE) * 4
    tile_r, vmem_limit = _tile_plan(r, 1, unit_vmem, weight_vmem, _SUBLANE)
    grid = (pl.cdiv(r, tile_r),)
    return pl.pallas_call(
        _mix_rows_kernel,
        out_shape=jax.ShapeDtypeStruct((r, c), out_dtype),
        grid=grid,
        in_specs=[
            pl.BlockSpec((c, c), lambda ri: (0, 0)),                    # W^T stays resident
            pl.BlockSpec((tile_r, c), lambda ri: (ri, 0)),
        ],
        out_specs=pl.BlockSpec((tile_r, c), lambda ri: (ri, 0)),
        compiler_params=pltpu.CompilerParams(
            dimension_semantics=("parallel",),
            vmem_limit_bytes=vmem_limit,
        ),
    )(wt32, x2d)


def invertible_conv1x1_1d_forward(x, w, dim: int):
    """Pallas forward of InvertibleConv1x1_1D: returns (z, logdet)."""
    w32 = w.astype(jnp.float32)   # keep the mixing matrix at parameter precision (f32)
    if dim == 1:
        # x: [B, C, N]
        z = _channel_mix_ncl(x, w32)
    elif dim in (2, -1):
        # x: [B, N, C] -> view as [B*N, C] rows (free, contiguous reshape) and stream
        # row tiles.  Handles lane-dense and lane-sparse C in 2 HBM passes — no
        # swapaxes round-trips.
        b, n, c = x.shape
        z2d = _channel_mix_rows(x.reshape(b * n, c), w32.T)
        z = z2d.reshape(b, n, c)
    else:
        raise NotImplementedError(f"Unsupported dim {dim} for InvertibleConv1x1_1D.")

    # Kept verbatim from the PyTorch module: slogdet(W)[1] * x.shape[-1].
    # (Note: for dim=2 the module multiplies by the channel count, since x.shape[-1]
    #  is C in that layout; the original module's semantics are preserved exactly.)
    # TODO(synk): slogdet has no clean Pallas equivalent; computed with jnp.linalg.slogdet.
    logdet = jnp.linalg.slogdet(w32)[1] * x.shape[-1]
    return z, logdet


# ---------------------------------------------------------------------------
# Demo / self-test
# ---------------------------------------------------------------------------
if __name__ == "__main__":
    key = jax.random.PRNGKey(0)
    k_w1, k_w3, k_x1, k_x2, k_x3 = jax.random.split(key, 5)

    def make_w(k, c):
        # Orthonormal init like the PyTorch module (QR of a random Gaussian).
        return jnp.linalg.qr(jax.random.normal(k, (c, c), dtype=jnp.float32))[0]

    def ref_forward(x, w, dim):
        eq = "ij,bjn->bin" if dim == 1 else "ij,bnj->bni"
        z = jnp.einsum(eq, w, x, precision=jax.lax.Precision.HIGHEST)
        return z, jnp.linalg.slogdet(w)[1] * x.shape[-1]

    tests = []
    # dim=1: x [B, C, N]
    c_small = 8
    w_small = make_w(k_w1, c_small)
    tests.append((jax.random.normal(k_x1, (2, c_small, 16), dtype=jnp.float32), w_small, 1))
    # dim=2, lane-sparse C -> direct row-tile path (masked stores, no swapaxes)
    tests.append((jax.random.normal(k_x2, (2, 16, c_small), dtype=jnp.float32), w_small, 2))
    # dim=2, lane-dense C (multiple of 128) -> same row-tile path, unmasked stores
    c_big = 128
    w_big = make_w(k_w3, c_big)
    tests.append((jax.random.normal(k_x3, (2, 64, c_big), dtype=jnp.float32), w_big, 2))

    for x, w, dim in tests:
        z, logdet = invertible_conv1x1_1d_forward(x, w, dim)
        z = jax.block_until_ready(z)
        logdet = jax.block_until_ready(logdet)

        z_ref, logdet_ref = ref_forward(x, w, dim)
        assert z.shape == z_ref.shape, (dim, z.shape, z_ref.shape)
        z_err = float(jnp.max(jnp.abs(z.astype(jnp.float32) - z_ref)))
        assert z_err < 2e-2, f"dim={dim}: max |z - z_ref| = {z_err}"
        l_err = float(jnp.abs(logdet - logdet_ref))
        assert l_err < 1e-3, f"dim={dim}: |logdet - logdet_ref| = {l_err}"

    print("KERNEL_OK")
</pallas_src>

<mosaic_0001>
module attributes {stable_mosaic.version = 11 : i64} {
  func.func @_mix_ncl_kernel(%arg0: i32, %arg1: i32, %arg2: memref<8x8xf32, #tpu.memory_space<vmem>>, %arg3: memref<1x8x16xf32, #tpu.memory_space<vmem>>, %arg4: memref<1x8x16xf32, #tpu.memory_space<vmem>>) attributes {dimension_semantics = [#tpu.dimension_semantics<parallel>, #tpu.dimension_semantics<parallel>], iteration_bounds = array<i64: 2, 1>, scalar_prefetch = 0 : i64, scratch_operands = 0 : i64, tpu.core_type = #tpu.core_type<tc>, window_params = [{pipeline_mode = #tpu.pipeline_mode<synchronous>, transform_indices = @transform_0, window_bounds = array<i64: 8, 8>}, {transform_indices = @transform_1, window_bounds = array<i64: 1, 8, 16>}, {transform_indices = @transform_2, window_bounds = array<i64: 1, 8, 16>}]} {
    %c0 = arith.constant 0 : index
    %c0_0 = arith.constant 0 : index
    %0 = vector.load %arg2[%c0, %c0_0] : memref<8x8xf32, #tpu.memory_space<vmem>>, vector<8x8xf32>
    %c0_1 = arith.constant 0 : index
    %c0_2 = arith.constant 0 : index
    %c0_3 = arith.constant 0 : index
    %1 = vector.load %arg3[%c0_1, %c0_2, %c0_3] : memref<1x8x16xf32, #tpu.memory_space<vmem>>, vector<1x8x16xf32>
    %2 = vector.shape_cast %1 : vector<1x8x16xf32> to vector<8x16xf32>
    %cst = arith.constant dense<0.000000e+00> : vector<8x16xf32>
    %3 = tpu.matmul %0, %2, %cst {dimension_numbers = #tpu.dot_dimension_numbers<[1], [0], [0], [1], [0, 0, 1, 1], [], []>} : vector<8x8xf32>, vector<8x16xf32>, vector<8x16xf32> -> vector<8x16xf32>
    %c0_4 = arith.constant 0 : index
    %c0_5 = arith.constant 0 : index
    %c0_6 = arith.constant 0 : index
    %4 = vector.load %arg4[%c0_4, %c0_5, %c0_6] : memref<1x8x16xf32, #tpu.memory_space<vmem>>, vector<1x8x16xf32>
    %5 = vector.shape_cast %4 : vector<1x8x16xf32> to vector<8x16xf32>
    %6 = vector.shape_cast %3 : vector<8x16xf32> to vector<1x8x16xf32>
    tpu.vector_store %arg4[%c0_4, %c0_5, %c0_6], %6 {strides = array<i32>} : memref<1x8x16xf32, #tpu.memory_space<vmem>>, vector<1x8x16xf32>,
    return
  }
  func.func @transform_0(%arg0: i32, %arg1: i32) -> (i32, i32) {
    %c0_i32 = arith.constant 0 : i32
    %c0_i32_0 = arith.constant 0 : i32
    %c0_i32_1 = arith.constant 0 : i32
    return %c0_i32, %c0_i32_0 : i32, i32
  }
  func.func @transform_1(%arg0: i32, %arg1: i32) -> (i32, i32, i32) {
    %c0_i32 = arith.constant 0 : i32
    %c0_i32_0 = arith.constant 0 : i32
    return %arg0, %c0_i32, %arg1 : i32, i32, i32
  }
  func.func @transform_2(%arg0: i32, %arg1: i32) -> (i32, i32, i32) {
    %c0_i32 = arith.constant 0 : i32
    %c0_i32_0 = arith.constant 0 : i32
    return %arg0, %c0_i32, %arg1 : i32, i32, i32
  }
}

</mosaic_0001>

<bundles_post_ra>
// kernel: tpu_custom_call.1
= control target key start
LH: loop header
LB: loop body
LE: loop exit
PB: predicated region body
PF: predicated region fallthrough
CT: control target
= control target key end

     0   :  { %7 = vsyncpa [#allocation3], 0  ;;  %s854_s0 = inlined_call_operand.hbm [shape: f32[8,8], index: 0, kind: input, shape index: {}]   ;;  %s855_s1 = inlined_call_operand.hbm [shape: f32[2,8,16], index: 1, kind: input, shape index: {}]   ;;  %s856_s2 = inlined_call_operand.hbm [shape: f32[2,8,16], index: 2, kind: output, shape index: {}]  }
   0x1   :  { %8 = vsyncpa [#allocation6], 0 }
   0x2   :  { %10 = vsyncpa [#allocation6 + $0x1], 0 }
   0x3   :  { %11 = vsyncpa [#allocation4], 0 }
   0x4   :  { %13 = vsyncpa [#allocation4 + $0x1], 0  ;;  %s638_s9 = smov 0   ;;  %s640_s10 = smov 0  }
   0x5   :  { %s642_s11 = smov 0   ;;  %s644_s12 = smov 0  }
   0x6   :  { %s646_s13 = smov 0   ;;  %s648_s14 = smov 0  }
   0x7 LB: > { %s374_s15 = sadd.s32 4294967295, %s616_s14   ;;  %s375_s16 = sadd.s32 4294967294, %s616_s14   ;;  %s616_s14 = sphi %s648_s14, %s19_s14   ;;  %s612_s13 = sphi %s646_s13, %s881_s13   ;;  %s608_s12 = sphi %s644_s12, %s880_s12   ;;  %s604_s11 = sphi %s642_s11, %s879_s11   ;;  %s600_s10 = sphi %s640_s10, %s878_s10   ;;  %s596_s9 = sphi %s638_s9, %s877_s9  }
   0x8   : > { %p74_p0 = scmp.ne.s32.totalorder %s600_s10, %s596_s9  ;;  %p672_p1 = scmp.eq.s32.totalorder %s374_s15, 0 }
   0x9   : > { %p676_p2 = scmp.eq.s32.totalorder %s374_s15, 1  ;;  %p106_p3 = scmp.eq.s32.totalorder %s375_s16, 1 }
   0xa   : > { %s861_s17 = scalar_select %p672_p1, 1, 0 }
   0xb   : > { %s862_s18 = scalar_select %p676_p2, 1, 0 }
   0xc   : > { %p682_p4 = por %p672_p1, %p74_p0  ;;  %p376_p5 = scmp.ge.s32.totalorder %s616_s14, 1 }
   0xd   : > { %p687_p6 = por %p106_p3, %p74_p0  ;;  %p113_p7 = scmp.lt.s32.totalorder %s616_s14, 3 }
   0xe   : > { %s863_s19 = scalar_select %p682_p4, 1, 0 }
   0xf   : > { %s864_s20 = scalar_select %p687_p6, 1, 0 }
  0x10   : > { %p692_p8 = pnand %p376_p5, %p113_p7  ;;  %s618_s22 = smov [#allocation2]  }
  0x11   : > { %s126_s23 = sshll.u32 %s618_s22, 4  ;;  %s31_s25 = sadd.s32 1, %s612_s13  ;;  %s127_s23 = int_to_ptr.vmem [resolvable:$true] %s126_s23 }
  0x12   : > { %s865_s21 = scalar_select %p692_p8, 1, 0 }
  0x13   : > { %p405_p10 = pneg %p692_p8  ;;  %s61_s26 = sadd.s32 1, %s604_s11 }
  0x14   : > { %p707_p12 = scmp.ge.s32.totalorder %s31_s25, 2  ;;  %s472_s30 = scalar_lea.hbm %s854_s0, 128 }
  0x15   : > { %p701_p11 = pnand %p405_p10, %p672_p1  ;;  %p473_p13 = scmp.ne.s32.totalorder %s854_s0, %s472_s30 }
  0x16   : > { %s867_s27 = scalar_select %p707_p12, 1, 0 }
  0x17   : > { %p474_p0 = pneg %p701_p11  ;;  %p479_p7 = scmp.lt.u32.totalorder %s472_s30, %s854_s0 }
  0x19   : > { %p475_p3 = pnand %p474_p0, %p473_p13 }
  0x1b   : > { %p476_p5 = pneg %p475_p3 }
  0x1d   : > { %p481_p10 = pnand %p479_p7, %p476_p5 }
  0x1f   : > { %484 = shalt.err (!%p481_p10)
}
  0x20   : > { %s485_s7 = scalar_lea.vmem %s127_s23, 128  ;;  %p493_p1 = scmp.lt.s32.totalorder %s127_s23, %s127_s23 }
  0x21   : > { %p486_p9 = scmp.ne.s32.totalorder %s127_s23, %s485_s7  ;;  %p494_p8 = scmp.lt.s32.totalorder %s485_s7, %s485_s7 }
  0x23   : > { %p488_p6 = pnand %p486_p9, %p474_p0  ;;  %p495_p2 = por %p494_p8, %p493_p1 }
  0x25   : > { %p489_p4 = pneg %p488_p6 }
  0x27   : > { %p496_p12 = pnand %p495_p2, %p489_p4 }
  0x29   : > { %499 = shalt.err (!%p496_p12)
}
  0x2a   : > { %408 = dma.hbm_to_vmem [thread:$0]  (!%p701_p11), %s854_s0, 128, %s127_s23, [#allocation3]  }
  0x2b   : > { %p868_p1 = scmp.ne.s32.totalorder %s867_s27, 0  ;;  %p68_p2 = scmp.ne.s32.totalorder %s604_s11, %s600_s10 }
  0x2c   : > { %p69_p4 = scmp.eq.s32.totalorder %s616_s14, 0  ;;  %p418_p6 = scmp.lt.s32.totalorder %s616_s14, 2 }
  0x2d   : > { %s883_s25 = smov (%p868_p1, %s31_s25), 0  ;;  %p869_p12 = scmp.ne.s32.totalorder %s862_s18, 0 }
  0x2e   : > { %s56_s16 = ssub.s32 %s612_s13, %s883_s25  ;;  %p70_p9 = por %p69_p4, %p68_p2 }
  0x2f   : > { %p59_p8 = scmp.eq.s32.totalorder %s56_s16, 0  ;;  %p739_p13 = por %p869_p12, %p68_p2 }
  0x30   : > { %s137_s24 = sand.u32 1, %s604_s11   ;;  %s380_s27 = sshll.u32 %s612_s13, 7 }
  0x31   : > { %s747_s28 = scalar_select %p59_p8, %s604_s11, %s61_s26  }
  0x32   : > { %s379_s23 = sshll.u32 %s137_s24, 3  ;;  %s753_s3 = scalar_lea.hbm %s855_s1, %s380_s27 }
  0x33   : > { %s141_s18 = scalar_lea.vmem [#allocation5], %s379_s23  ;;  %p757_p11 = pnand %p418_p6, %p70_p9 }
  0x34   : > { %s149_s4 = sshll.u32 %s141_s18, 4  ;;  %s138_s26 = scalar_lea.sflag [#allocation6], %s137_s24  ;;  %s755_s4 = int_to_ptr.vmem [resolvable:$true] %s149_s4 }
  0x35   : > { %s500_s6 = scalar_lea.hbm %s753_s3, 128  ;;  %p502_p3 = pneg %p757_p11 }
  0x36   : > { %p501_p0 = scmp.ne.s32.totalorder %s753_s3, %s500_s6  ;;  %s505_s15 = scalar_lea.hbm %s855_s1, 256 }
  0x37   : > { %p506_p10 = scmp.lt.u32.totalorder %s753_s3, %s855_s1  ;;  %p507_p1 = scmp.lt.u32.totalorder %s505_s15, %s500_s6 }
  0x38   : > { %p503_p5 = pnand %p502_p3, %p501_p0  ;;  %p509_p4 = scmp.lt.u32.totalorder %s500_s6, %s753_s3 }
  0x39   : > { %p508_p2 = por %p507_p1, %p506_p10 }
  0x3a   : > { %p504_p7 = pneg %p503_p5 }
  0x3b   : > { %p510_p6 = por %p509_p4, %p508_p2 }
  0x3d   : > { %p511_p8 = pnand %p510_p6, %p504_p7 }
  0x3f   : > { %514 = shalt.err (!%p511_p8)
}
  0x40   : > { %s515_s24 = scalar_lea.vmem %s755_s4, 128  ;;  %s619_s27 = smov [#allocation5]  }
  0x41   : > { %p516_p9 = scmp.ne.s32.totalorder %s755_s4, %s515_s24  ;;  %s520_s29 = sshll.u32 %s619_s27, 4  ;;  %s521_s29 = int_to_ptr.vmem [resolvable:$false] %s520_s29 }
  0x42   : > { %s522_s30 = scalar_lea.vmem %s521_s29, 256  ;;  %p523_p5 = scmp.lt.s32.totalorder %s755_s4, %s521_s29 }
  0x43   : > { %p518_p12 = pnand %p516_p9, %p502_p3  ;;  %p524_p10 = scmp.lt.s32.totalorder %s522_s30, %s515_s24 }
  0x45   : > { %p519_p0 = pneg %p518_p12  ;;  %p525_p1 = por %p524_p10, %p523_p5 }
  0x47   : > { %p526_p2 = pnand %p525_p1, %p519_p0 }
  0x49   : > { %529 = shalt.err (!%p526_p2)
}
  0x4a   : > { %412 = dma.hbm_to_vmem [thread:$0]  (!%p757_p11), %s753_s3, 128, %s755_s4, %s138_s26  }
  0x4b   : > { %p872_p7 = scmp.ne.s32.totalorder %s865_s21, 0 }
  0x4c   : > { %p873_p3 = scmp.ne.s32.totalorder (!%p872_p7), %s861_s17, 0 }
  0x4d   : > { %158 = sbr.rel (%p872_p7) target bundleno = 318 (0x13e), region = 28 }
  0x54   : > { %583 = dma.done.wait (%p873_p3), [#allocation3], 128  }
  0x55   : > { %585 = vsyncadd (%p873_p3), [#allocation3], 4294967168  ;;  %s793_s18 = sand.u32 1, %s600_s10   ;;  %p874_p4 = scmp.ne.s32.totalorder %s863_s19, 0 }
  0x56   : > { %s383_s6 = sshll.u32 %s793_s18, 3  ;;  %s165_s5 = scalar_lea.sflag [#allocation6], %s793_s18 }
  0x57   : > { %s168_s7 = scalar_lea.vmem [#allocation5], %s383_s6 }
  0x58   : > { %587 = dma.done.wait (%p874_p4), %s165_s5, 128  }
  0x59   : > { %589 = vsyncadd (%p874_p4), %s165_s5, 4294967168  ;;  %v620_v0 = vmov 0.0   ;;  %vm621_vm0 = vmmov 0   ;;  %vm191_vm1 = vcmask 64512   ;;  %v190_v1 = vld [vmem:[%s168_s7] sm:$0xff]  ;;  %v189_v2 = vld [vmem:[#allocation2] sm:$0xff] }
  0x5a   : > { %392 = vmatprep.subr.mxu0 %v620_v0  ;;  %394 = vmatprep.mubr.msk.f32.mxu0 %vm621_vm0, %v620_v0  ;;  %s387_s17 = sshll.u32 %s608_s12, 7  ;;  %s188_s21 = scalar_lea.vmem [#allocation7], %s383_s6  ;;  %vm265_vm2 = vcmask 130048  }
  0x5b   : > { %393 = vmatpush3.msra.mxu0 %v190_v1  ;;  %s282_s3 = sshll.u32 %s188_s21, 4  ;;  %s805_s19 = scalar_lea.hbm %s856_s2, %s387_s17  ;;  %s807_s3 = int_to_ptr.vmem [resolvable:$true] %s282_s3 }
  0x5c   : > { %395 = vmatmul.mubr.msk.f32.vlgmr.msra.gmra.mrb[0].mxu0 %vm191_vm1, %v189_v2  ;;  %s268_s8 = scalar_lea.sflag [#allocation4], %s793_s18  ;;  %s530_s15 = scalar_lea.vmem %s807_s3, 128 }
  0x5d   : > { %p531_p11 = scmp.ne.s32.totalorder %s807_s3, %s530_s15  ;;  %s622_s12 = smov [#allocation7]  }
  0x5e   : > { %s534_s16 = sshll.u32 %s622_s12, 4  ;;  %s535_s16 = int_to_ptr.vmem [resolvable:$false] %s534_s16 }
  0x5f   : > { %p532_p6 = pnand %p531_p11, %p739_p13  ;;  %s536_s23 = scalar_lea.vmem %s535_s16, 256 }
  0x60   : > { %p537_p9 = scmp.lt.s32.totalorder %s807_s3, %s535_s16  ;;  %p538_p12 = scmp.lt.s32.totalorder %s536_s23, %s530_s15 }
  0x61   : > { %p533_p8 = pneg %p532_p6 }
  0x62   : > { %p539_p0 = por %p538_p12, %p537_p9 }
  0x64   : > { %p540_p5 = pnand %p539_p0, %p533_p8 }
 0x12f   : > { %v261_v3 = vpop.f32.mrb[0].mxu0 }
 0x130   : > { %266 = vst.msk [vmem:[%s188_s21] sm:$0xff] %vm265_vm2, %v261_v3  ;;  %v396_v4 = vpop.f32.mrb[1].mxu0 }
 0x131   : > { %543 = shalt.err (!%p540_p5)
}
 0x132   : > { %s544_s24 = scalar_lea.hbm %s805_s19, 128  ;;  %s548_s30 = scalar_lea.hbm %s856_s2, 256 }
 0x133   : > { %p545_p10 = scmp.ne.s32.totalorder %s805_s19, %s544_s24  ;;  %p549_p7 = scmp.lt.u32.totalorder %s805_s19, %s856_s2 }
 0x134   : > { %p550_p3 = scmp.lt.u32.totalorder %s548_s30, %s544_s24  ;;  %p552_p11 = scmp.lt.u32.totalorder %s544_s24, %s805_s19 }
 0x135   : > { %p546_p1 = pnand %p545_p10, %p739_p13 }
 0x136   : > { %p551_p4 = por %p550_p3, %p549_p7 }
 0x137   : > { %p547_p2 = pneg %p546_p1 }
 0x138   : > { %p553_p6 = por %p552_p11, %p551_p4 }
 0x13a   : > { %p554_p8 = pnand %p553_p6, %p547_p2 }
 0x13c   : > { %557 = shalt.err (!%p554_p8)
}
 0x13d   : > { %403 = dma.vmem_to_hbm [thread:$0]  (%p739_p13), %s807_s3, 128, %s805_s19, %s268_s8  }
 0x13e PF: > { %s294_s5 = sand.u32 1, %s596_s9   ;;  %p875_p9 = scmp.ne.s32.totalorder %s864_s20, 0 }
 0x13f   : > { %p876_p12 = scmp.ge.s32.totalorder %s616_s14, 2  ;;  %s295_s7 = scalar_lea.sflag [#allocation4], %s294_s5 }
 0x141   : > { %p414_p0 = pnand %p876_p12, %p875_p9 }
 0x143   : > { %591 = dma.done.wait (!%p414_p0), %s295_s7, 128  }
 0x144   : > { %593 = vsyncadd (!%p414_p0), %s295_s7, 4294967168  ;;  %s19_s14 = sadd.s32 1, %s616_s14   ;;  %s877_s9 = smov %s600_s10 }
 0x145   : > { %p16_p5 = scmp.ge.s32.totalorder %s19_s14, 4   ;;  %s878_s10 = smov %s604_s11 }
 0x146   : > { %s879_s11 = smov %s747_s28  ;;  %s880_s12 = smov %s612_s13 }
 0x147   : > { %s881_s13 = smov %s883_s25  ;;  %18 = sbr.rel (!%p16_p5) target bundleno = 7 (0x7), region = 78 }
 0x14e   :  { %300 = vsyncpa [#allocation3], 1 }
 0x14f   :  { %302 = vsyncpa [#allocation3 + $0x1], 1 }
 0x150   :  { %303 = vsyncpa [#allocation6], 1 }
 0x151   :  { %305 = vsyncpa [#allocation6 + $0x1], 1 }
 0x152   :  { %306 = vsyncpa [#allocation4], 1 }
 0x153   :  { %308 = vsyncpa [#allocation4 + $0x1], 1 }

</bundles_post_ra>
